<compile_context>
chip_gen: v7x
topology: tpu7x:2x2x1
jax: 0.10.0
libtpu: 0.0.40
codegen_flags: <defaults>
</compile_context>

<pallas_src>
import functools

import jax
import jax.numpy as jnp
from jax.experimental import pallas as pl
from jax.experimental.pallas import tpu as pltpu

GN_EPS = 1e-6   # SpatialTransformer: GroupNorm(32, C, eps=1e-06)
LN_EPS = 1e-5   # torch.nn.LayerNorm default


def _mm(a, w):
    """MXU matmul: activations cast to bf16, weights already bf16, fp32 accumulation."""
    return jnp.dot(a.astype(jnp.bfloat16), w, preferred_element_type=jnp.float32)


def _gelu_tanh(v):
    # TODO(synk): torch F.gelu default is exact erf GELU; tanh approximation used here
    # (max abs deviation ~3e-3) to stay on well-supported EUP ops.
    c = 0.7978845608028654  # sqrt(2/pi)
    return 0.5 * v * (1.0 + jnp.tanh(c * (v + 0.044715 * v * v * v)))


def _layer_norm(v, g, b):
    mu = jnp.mean(v, axis=-1, keepdims=True)
    d = v - mu
    var = jnp.mean(d * d, axis=-1, keepdims=True)
    return d * (jax.lax.rsqrt(var + LN_EPS) * g) + b


def _vmem_limit_bytes():
    """Generation-aware scoped-VMEM limit: ~3/4 of physical capacity, capped at 112 MiB
    (v7x: 64 MiB phys -> 48 MiB; v5e/v6e: 128 MiB phys -> 96 MiB)."""
    try:
        cap = pltpu.get_tpu_info().vmem_capacity_bytes
        return int(min(cap * 3 // 4, 112 * 1024 * 1024))
    except Exception:
        return 64 * 1024 * 1024


# -------------------- stage 1: GroupNorm statistics (two-pass) --------------------
def gn_stats_kernel(x_ref, g_ref, b_ref, ss_ref, *, n_groups):
    x = x_ref[0]                                   # (S, C) fp32, channels on lanes
    S, C = x.shape
    G = n_groups
    cg = C // G
    # group one-hots built in-kernel from iota (no extra inputs / DMAs)
    c_i = jax.lax.broadcasted_iota(jnp.int32, (C, G), 0)
    g_i = jax.lax.broadcasted_iota(jnp.int32, (C, G), 1)
    oh_cg = ((c_i >= g_i * cg) & (c_i < (g_i + 1) * cg)).astype(jnp.float32)   # (C, G)
    g_j = jax.lax.broadcasted_iota(jnp.int32, (G, C), 0)
    c_j = jax.lax.broadcasted_iota(jnp.int32, (G, C), 1)
    oh_gc = ((c_j >= g_j * cg) & (c_j < (g_j + 1) * cg)).astype(jnp.float32)   # (G, C)
    n = float(S * cg)
    # two-pass: mean first, then variance of the centered data (fp32)
    s1 = jnp.sum(x, axis=0, keepdims=True)                                     # (1, C)
    gmean = jnp.dot(s1, oh_cg, preferred_element_type=jnp.float32) / n         # (1, G)
    mean_c = jnp.dot(gmean, oh_gc, preferred_element_type=jnp.float32)         # (1, C)
    d = x - mean_c
    s2 = jnp.sum(d * d, axis=0, keepdims=True)                                 # (1, C)
    gvar = jnp.dot(s2, oh_cg, preferred_element_type=jnp.float32) / n          # (1, G)
    ginv = jax.lax.rsqrt(gvar + GN_EPS)
    inv_c = jnp.dot(ginv, oh_gc, preferred_element_type=jnp.float32)           # (1, C)
    scale_c = inv_c * g_ref[...]
    shift_c = b_ref[...] - mean_c * scale_c
    ss_ref[0] = jnp.concatenate([scale_c, shift_c], axis=0)                    # (2, C)


# ---- stage 2: GN apply + proj_in + LN1 + self-attention K/V, tiled over S --------
def gn_proj_kv_kernel(x_ref, ss_ref, w_in_ref, b_in_ref, ln1_g_ref, ln1_b_ref,
                      wk1_ref, wv1_ref, h0_ref, k1_ref, v1_ref):
    x = x_ref[0]                                   # (St, C)
    ss = ss_ref[0]                                 # (2, C): folded GN scale / shift
    hc = x * ss[0:1, :] + ss[1:2, :]
    h0 = _mm(hc, w_in_ref[...]) + b_in_ref[...]    # proj_in: 1x1 conv == matmul
    h0_ref[0] = h0
    ln1 = _layer_norm(h0, ln1_g_ref[...], ln1_b_ref[...])
    k1_ref[0] = _mm(ln1, wk1_ref[...]).astype(jnp.bfloat16)
    v1_ref[0] = _mm(ln1, wv1_ref[...]).astype(jnp.bfloat16)


# ---- stage 3: attn1 + attn2 + GEGLU FF + proj_out + residual, tiled over q rows ---
def transformer_block_kernel(
    xin_ref, h0_ref, k1_ref, v1_ref, ctx_ref,
    ln_g_ref, ln_b_ref,
    wq1_ref, wo1_ref, bo1_ref,
    wq2_ref, wk2_ref, wv2_ref, wo2_ref, bo2_ref,
    wffv_ref, bffv_ref, wffg_ref, bffg_ref, wff2_ref, bff2_ref,
    w_out_ref, b_out_ref,
    out_ref, o_scr,
    *, n_heads, d_head):
    x_in = xin_ref[0]          # (St, C) original input tile (outer residual)
    h = h0_ref[0]              # (St, D) post proj_in
    k1 = k1_ref[0]             # (S, D) bf16, full sequence
    v1 = v1_ref[0]             # (S, D) bf16, full sequence
    ctx = ctx_ref[0]           # (L, Dc) fp32
    ln_g = ln_g_ref[...]       # (3, D)
    ln_b = ln_b_ref[...]       # (3, D)
    att_scale = 1.0 / (d_head ** 0.5)

    def attention(q, k_bf, v_bf, wo, bo):
        # q: (St, D) fp32 already projected & scaled. Per-head outputs are written into
        # ONE (St, D) bf16 scratch, then a single full-K W_out matmul after the loop.
        for hh in range(n_heads):            # static unroll over heads
            lo = hh * d_head
            qh = q[:, lo:lo + d_head].astype(jnp.bfloat16)
            kh = k_bf[:, lo:lo + d_head]
            vh = v_bf[:, lo:lo + d_head]
            sim = jax.lax.dot_general(qh, kh, (((1,), (1,)), ((), ())),
                                      preferred_element_type=jnp.float32)   # (St, L)
            m = jnp.max(sim, axis=-1, keepdims=True)
            p = jnp.exp(sim - m)
            p = p / jnp.sum(p, axis=-1, keepdims=True)      # exact reciprocal (fp32)
            o_scr[:, lo:lo + d_head] = jnp.dot(
                p.astype(jnp.bfloat16), vh,
                preferred_element_type=jnp.float32).astype(jnp.bfloat16)
        return jnp.dot(o_scr[...], wo, preferred_element_type=jnp.float32) + bo

    # self-attention: K/V for the whole sequence were precomputed by stage 2
    ln1 = _layer_norm(h, ln_g[0:1], ln_b[0:1])
    q1 = _mm(ln1, wq1_ref[...]) * att_scale
    h = h + attention(q1, k1, v1, wo1_ref[...], bo1_ref[...])

    # cross-attention: context is short -> recompute its K/V per q-tile (negligible)
    ln2 = _layer_norm(h, ln_g[1:2], ln_b[1:2])
    q2 = _mm(ln2, wq2_ref[...]) * att_scale
    k2 = _mm(ctx, wk2_ref[...]).astype(jnp.bfloat16)
    v2 = _mm(ctx, wv2_ref[...]).astype(jnp.bfloat16)
    h = h + attention(q2, k2, v2, wo2_ref[...], bo2_ref[...])

    # GEGLU feed-forward with the projection split into value / gate halves so the
    # (St, 8D) concatenated intermediate is never materialized.
    ln3 = _layer_norm(h, ln_g[2:3], ln_b[2:3])
    val = _mm(ln3, wffv_ref[...]) + bffv_ref[...]
    gate = _mm(ln3, wffg_ref[...]) + bffg_ref[...]
    h = h + _mm(val * _gelu_tanh(gate), wff2_ref[...]) + bff2_ref[...]

    # proj_out (zero-initialized in the module) + outer residual
    y = _mm(h, w_out_ref[...]) + b_out_ref[...]
    out_ref[0] = (y + x_in).astype(out_ref.dtype)


def spatial_transformer(x, context, params, *, n_heads, d_head, n_groups=32,
                        q_tile=256, kv_tile=512):
    """x: (B, C, H, W) fp32, context: (B, L, Dc) fp32, params: dict (math layouts)."""
    B, C, H, W = x.shape
    S = H * W
    _, L, Dc = context.shape
    D = n_heads * d_head
    F = params["wff2"].shape[0]
    assert C % n_groups == 0, "GroupNorm(32, C) requires C % 32 == 0"
    assert params["w_in"].shape == (C, D)
    # TODO(synk): dropout layers are identity (p=0.0 / eval mode).

    f32, bf16 = jnp.float32, jnp.bfloat16
    v2 = lambda a: a.reshape(1, -1).astype(f32)      # vectors -> lane-major (1, N) fp32

    # NCHW -> (B, S, C): channels on the lane axis so every linear layer is an MXU matmul.
    xs = jnp.transpose(x, (0, 2, 3, 1)).reshape(B, S, C)
    ctx = context.astype(f32)

    q_tile = min(q_tile, S)
    kv_tile = min(kv_tile, S)
    assert S % q_tile == 0 and S % kv_tile == 0, "spatial extent must tile evenly"
    # TODO(synk): prefer 256-multiples for q_tile/kv_tile on v6e/v7x, 128 on v5e.

    vlim = _vmem_limit_bytes()
    cp = lambda sem: pltpu.CompilerParams(dimension_semantics=sem,
                                          vmem_limit_bytes=vlim)

    # ---------------- stage 1: GroupNorm statistics ----------------
    stats = pl.pallas_call(
        functools.partial(gn_stats_kernel, n_groups=n_groups),
        out_shape=jax.ShapeDtypeStruct((B, 2, C), f32),
        grid_spec=pltpu.PrefetchScalarGridSpec(
            num_scalar_prefetch=0, grid=(B,),
            in_specs=[pl.BlockSpec((1, S, C), lambda b: (b, 0, 0)),
                      pl.BlockSpec((1, C), lambda b: (0, 0)),
                      pl.BlockSpec((1, C), lambda b: (0, 0))],
            out_specs=pl.BlockSpec((1, 2, C), lambda b: (b, 0, 0))),
        compiler_params=cp(("parallel",)),
    )(xs, v2(params["gn_g"]), v2(params["gn_b"]))

    # ---------------- stage 2: GN apply + proj_in + LN1 + K/V ----------------
    p2 = [params["w_in"].astype(bf16), v2(params["b_in"]),
          v2(params["ln1_g"]), v2(params["ln1_b"]),
          params["wk1"].astype(bf16), params["wv1"].astype(bf16)]
    in_specs2 = ([pl.BlockSpec((1, kv_tile, C), lambda b, s: (b, s, 0)),
                  pl.BlockSpec((1, 2, C), lambda b, s: (b, 0, 0))]
                 + [pl.BlockSpec(p.shape, lambda b, s: (0, 0)) for p in p2])
    h0, k1, v1 = pl.pallas_call(
        gn_proj_kv_kernel,
        out_shape=(jax.ShapeDtypeStruct((B, S, D), f32),
                   jax.ShapeDtypeStruct((B, S, D), bf16),
                   jax.ShapeDtypeStruct((B, S, D), bf16)),
        grid_spec=pltpu.PrefetchScalarGridSpec(
            num_scalar_prefetch=0, grid=(B, S // kv_tile),
            in_specs=in_specs2,
            out_specs=[pl.BlockSpec((1, kv_tile, D), lambda b, s: (b, s, 0))] * 3),
        compiler_params=cp(("parallel", "parallel")),
    )(xs, stats, *p2)

    # ---------------- stage 3: transformer block + proj_out + residual ----------------
    p3 = [jnp.stack([params["ln1_g"], params["ln2_g"], params["ln3_g"]]).astype(f32),
          jnp.stack([params["ln1_b"], params["ln2_b"], params["ln3_b"]]).astype(f32),
          params["wq1"].astype(bf16), params["wo1"].astype(bf16), v2(params["bo1"]),
          params["wq2"].astype(bf16), params["wk2"].astype(bf16),
          params["wv2"].astype(bf16), params["wo2"].astype(bf16), v2(params["bo2"]),
          params["wff1"][:, :F].astype(bf16), v2(params["bff1"][:F]),     # GEGLU value
          params["wff1"][:, F:].astype(bf16), v2(params["bff1"][F:]),     # GEGLU gate
          params["wff2"].astype(bf16), v2(params["bff2"]),
          params["w_out"].astype(bf16), v2(params["b_out"])]
    in_specs3 = ([pl.BlockSpec((1, q_tile, C), lambda b, s: (b, s, 0)),   # x_in tile
                  pl.BlockSpec((1, q_tile, D), lambda b, s: (b, s, 0)),   # h0 tile
                  pl.BlockSpec((1, S, D), lambda b, s: (b, 0, 0)),        # K1 full seq
                  pl.BlockSpec((1, S, D), lambda b, s: (b, 0, 0)),        # V1 full seq
                  pl.BlockSpec((1, L, Dc), lambda b, s: (b, 0, 0))]       # context
                 + [pl.BlockSpec(p.shape, lambda b, s: (0, 0)) for p in p3])
    out = pl.pallas_call(
        functools.partial(transformer_block_kernel, n_heads=n_heads, d_head=d_head),
        out_shape=jax.ShapeDtypeStruct((B, S, C), f32),
        grid_spec=pltpu.PrefetchScalarGridSpec(
            num_scalar_prefetch=0, grid=(B, S // q_tile),
            in_specs=in_specs3,
            out_specs=pl.BlockSpec((1, q_tile, C), lambda b, s: (b, s, 0)),
            scratch_shapes=[pltpu.VMEM((q_tile, D), bf16)]),
        compiler_params=cp(("parallel", "parallel")),
    )(xs, h0, k1, v1, ctx, *p3)

    return jnp.transpose(out.reshape(B, H, W, C), (0, 3, 1, 2))


# -------------------- pure-JAX reference (mirrors the PyTorch forward) --------------------
def ref_forward(x, ctx, p, *, n_heads, d_head, n_groups=32):
    B, C, H, W = x.shape
    S = H * W
    D = n_heads * d_head

    xg = x.reshape(B, n_groups, C // n_groups, H, W)
    mu = xg.mean(axis=(2, 3, 4), keepdims=True)
    var = ((xg - mu) ** 2).mean(axis=(2, 3, 4), keepdims=True)
    xn = ((xg - mu) / jnp.sqrt(var + GN_EPS)).reshape(B, C, H, W)
    xn = xn * p["gn_g"][None, :, None, None] + p["gn_b"][None, :, None, None]

    h = jnp.transpose(xn, (0, 2, 3, 1)).reshape(B, S, C)
    h = h @ p["w_in"] + p["b_in"]

    def layer_norm(v, g, b):
        m = v.mean(-1, keepdims=True)
        va = ((v - m) ** 2).mean(-1, keepdims=True)
        return (v - m) / jnp.sqrt(va + LN_EPS) * g + b

    def attention(q_in, kv_in, wq, wk, wv, wo, bo):
        q = q_in @ wq
        k = kv_in @ wk
        v = kv_in @ wv
        Bq, Sq, _ = q.shape
        Lk = k.shape[1]
        qh = q.reshape(Bq, Sq, n_heads, d_head).transpose(0, 2, 1, 3)
        kh = k.reshape(Bq, Lk, n_heads, d_head).transpose(0, 2, 1, 3)
        vh = v.reshape(Bq, Lk, n_heads, d_head).transpose(0, 2, 1, 3)
        sim = jnp.einsum("bhid,bhjd->bhij", qh, kh) * (d_head ** -0.5)
        pr = jax.nn.softmax(sim, axis=-1)
        o = jnp.einsum("bhij,bhjd->bhid", pr, vh)
        o = o.transpose(0, 2, 1, 3).reshape(Bq, Sq, D)
        return o @ wo + bo

    ln1 = layer_norm(h, p["ln1_g"], p["ln1_b"])
    h = h + attention(ln1, ln1, p["wq1"], p["wk1"], p["wv1"], p["wo1"], p["bo1"])
    ln2 = layer_norm(h, p["ln2_g"], p["ln2_b"])
    h = h + attention(ln2, ctx, p["wq2"], p["wk2"], p["wv2"], p["wo2"], p["bo2"])
    ln3 = layer_norm(h, p["ln3_g"], p["ln3_b"])
    pr = ln3 @ p["wff1"] + p["bff1"]
    Fi = p["wff2"].shape[0]
    gg = pr[..., :Fi] * jax.nn.gelu(pr[..., Fi:], approximate=True)
    h = h + gg @ p["wff2"] + p["bff2"]

    y = h @ p["w_out"] + p["b_out"]
    y = jnp.transpose(y.reshape(B, H, W, C), (0, 3, 1, 2))
    return y + x


def init_params(key, C, D, Dc, zero_proj_out=True):
    """Parameter init matching the module layer shapes (weights stored in math layout:
    the transpose of the corresponding torch (out, in) weight)."""
    F = 4 * D
    ks = iter(jax.random.split(key, 32))

    def lin(k, fan_in, shape):
        bound = 1.0 / (fan_in ** 0.5)
        return jax.random.uniform(k, shape, jnp.float32, -bound, bound)

    p = {
        "gn_g": jnp.ones((C,), jnp.float32), "gn_b": jnp.zeros((C,), jnp.float32),
        "w_in": lin(next(ks), C, (C, D)), "b_in": lin(next(ks), C, (D,)),
    }
    for i in (1, 2, 3):
        p[f"ln{i}_g"] = jnp.ones((D,), jnp.float32)
        p[f"ln{i}_b"] = jnp.zeros((D,), jnp.float32)
    p["wq1"] = lin(next(ks), D, (D, D))
    p["wk1"] = lin(next(ks), D, (D, D))
    p["wv1"] = lin(next(ks), D, (D, D))
    p["wo1"] = lin(next(ks), D, (D, D))
    p["bo1"] = lin(next(ks), D, (D,))
    p["wq2"] = lin(next(ks), D, (D, D))
    p["wk2"] = lin(next(ks), Dc, (Dc, D))
    p["wv2"] = lin(next(ks), Dc, (Dc, D))
    p["wo2"] = lin(next(ks), D, (D, D))
    p["bo2"] = lin(next(ks), D, (D,))
    p["wff1"] = lin(next(ks), D, (D, 2 * F))
    p["bff1"] = lin(next(ks), D, (2 * F,))
    p["wff2"] = lin(next(ks), F, (F, D))
    p["bff2"] = lin(next(ks), F, (D,))
    if zero_proj_out:   # zero_module(proj_out) as in __init__
        p["w_out"] = jnp.zeros((D, C), jnp.float32)
        p["b_out"] = jnp.zeros((C,), jnp.float32)
    else:
        p["w_out"] = lin(next(ks), D, (D, C))
        p["b_out"] = lin(next(ks), D, (C,))
    return p


if __name__ == "__main__":
    key = jax.random.PRNGKey(0)
    kx, kc, kp = jax.random.split(key, 3)
    B, C, H, W = 2, 32, 8, 8          # C must be divisible by 32 (GroupNorm(32, C))
    n_heads, d_head = 4, 16           # inner_dim D = 64
    L, Dc = 8, 32                     # context tokens / context_dim
    D = n_heads * d_head

    x = jax.random.normal(kx, (B, C, H, W), jnp.float32)
    ctx = jax.random.normal(kc, (B, L, Dc), jnp.float32)

    # Faithful module init: proj_out is zero_module -> output == input exactly.
    p0 = init_params(kp, C, D, Dc, zero_proj_out=True)
    out0 = jax.block_until_ready(
        spatial_transformer(x, ctx, p0, n_heads=n_heads, d_head=d_head))
    assert out0.shape == x.shape
    assert jnp.allclose(out0, x, atol=1e-5), "zero-init proj_out must act as identity"

    # Non-zero proj_out to numerically exercise the full fused pipeline (bf16 matmuls).
    p1 = init_params(kp, C, D, Dc, zero_proj_out=False)
    out1 = jax.block_until_ready(
        spatial_transformer(x, ctx, p1, n_heads=n_heads, d_head=d_head))
    ref1 = ref_forward(x, ctx, p1, n_heads=n_heads, d_head=d_head)
    assert jnp.allclose(out1, ref1, atol=5e-2, rtol=5e-2), \
        float(jnp.max(jnp.abs(out1 - ref1)))

    print("KERNEL_OK")
</pallas_src>

<mosaic_0001>
module attributes {stable_mosaic.version = 11 : i64} {
  func.func @gn_stats_kernel(%arg0: i32, %arg1: memref<1x64x32xf32, #tpu.memory_space<vmem>>, %arg2: memref<1x32xf32, #tpu.memory_space<vmem>>, %arg3: memref<1x32xf32, #tpu.memory_space<vmem>>, %arg4: memref<1x2x32xf32, #tpu.memory_space<vmem>>) attributes {dimension_semantics = [#tpu.dimension_semantics<parallel>], iteration_bounds = array<i64: 2>, scalar_prefetch = 0 : i64, scratch_operands = 0 : i64, tpu.core_type = #tpu.core_type<tc>, window_params = [{transform_indices = @transform_0, window_bounds = array<i64: 1, 64, 32>}, {pipeline_mode = #tpu.pipeline_mode<synchronous>, transform_indices = @transform_1, window_bounds = array<i64: 1, 32>}, {pipeline_mode = #tpu.pipeline_mode<synchronous>, transform_indices = @transform_2, window_bounds = array<i64: 1, 32>}, {transform_indices = @transform_3, window_bounds = array<i64: 1, 2, 32>}]} {
    %c0 = arith.constant 0 : index
    %c0_0 = arith.constant 0 : index
    %c0_1 = arith.constant 0 : index
    %0 = vector.load %arg1[%c0, %c0_0, %c0_1] : memref<1x64x32xf32, #tpu.memory_space<vmem>>, vector<1x64x32xf32>
    %1 = vector.shape_cast %0 : vector<1x64x32xf32> to vector<64x32xf32>
    %2 = tpu.iota {dimensions = array<i32: 0>} : vector<32x32xi32>
    %3 = tpu.iota {dimensions = array<i32: 1>} : vector<32x32xi32>
    %c1_i32 = arith.constant 1 : i32
    %4 = vector.broadcast %c1_i32 : i32 to vector<32x32xi32>
    %5 = arith.muli %3, %4 : vector<32x32xi32>
    %6 = arith.cmpi sge, %2, %5 : vector<32x32xi32>
    %c1_i32_2 = arith.constant 1 : i32
    %7 = vector.broadcast %c1_i32_2 : i32 to vector<32x32xi32>
    %8 = arith.addi %3, %7 : vector<32x32xi32>
    %c1_i32_3 = arith.constant 1 : i32
    %9 = vector.broadcast %c1_i32_3 : i32 to vector<32x32xi32>
    %10 = arith.muli %8, %9 : vector<32x32xi32>
    %11 = arith.cmpi slt, %2, %10 : vector<32x32xi32>
    %12 = arith.andi %6, %11 : vector<32x32xi1>
    %13 = arith.extui %12 : vector<32x32xi1> to vector<32x32xi32>
    %14 = arith.sitofp %13 : vector<32x32xi32> to vector<32x32xf32>
    %15 = tpu.iota {dimensions = array<i32: 0>} : vector<32x32xi32>
    %16 = tpu.iota {dimensions = array<i32: 1>} : vector<32x32xi32>
    %c1_i32_4 = arith.constant 1 : i32
    %17 = vector.broadcast %c1_i32_4 : i32 to vector<32x32xi32>
    %18 = arith.muli %15, %17 : vector<32x32xi32>
    %19 = arith.cmpi sge, %16, %18 : vector<32x32xi32>
    %c1_i32_5 = arith.constant 1 : i32
    %20 = vector.broadcast %c1_i32_5 : i32 to vector<32x32xi32>
    %21 = arith.addi %15, %20 : vector<32x32xi32>
    %c1_i32_6 = arith.constant 1 : i32
    %22 = vector.broadcast %c1_i32_6 : i32 to vector<32x32xi32>
    %23 = arith.muli %21, %22 : vector<32x32xi32>
    %24 = arith.cmpi slt, %16, %23 : vector<32x32xi32>
    %25 = arith.andi %19, %24 : vector<32x32xi1>
    %26 = arith.extui %25 : vector<32x32xi1> to vector<32x32xi32>
    %27 = arith.sitofp %26 : vector<32x32xi32> to vector<32x32xf32>
    %cst = arith.constant dense<0.000000e+00> : vector<32xf32>
    %28 = vector.multi_reduction <add>, %1, %cst [0] : vector<64x32xf32> to vector<32xf32>
    %29 = vector.shape_cast %28 : vector<32xf32> to vector<1x32xf32>
    %cst_7 = arith.constant dense<0.000000e+00> : vector<1x32xf32>
    %30 = tpu.matmul %29, %14, %cst_7 {dimension_numbers = #tpu.dot_dimension_numbers<[1], [0], [0], [1], [0, 0, 1, 1], [], []>} : vector<1x32xf32>, vector<32x32xf32>, vector<1x32xf32> -> vector<1x32xf32>
    %cst_8 = arith.constant 6.400000e+01 : f32
    %31 = vector.broadcast %cst_8 : f32 to vector<1x32xf32>
    %32 = arith.divf %30, %31 : vector<1x32xf32>
    %cst_9 = arith.constant dense<0.000000e+00> : vector<1x32xf32>
    %33 = tpu.matmul %32, %27, %cst_9 {dimension_numbers = #tpu.dot_dimension_numbers<[1], [0], [0], [1], [0, 0, 1, 1], [], []>} : vector<1x32xf32>, vector<32x32xf32>, vector<1x32xf32> -> vector<1x32xf32>
    %34 = vector.broadcast %33 : vector<1x32xf32> to vector<64x32xf32>
    %35 = arith.subf %1, %34 : vector<64x32xf32>
    %36 = arith.mulf %35, %35 : vector<64x32xf32>
    %cst_10 = arith.constant dense<0.000000e+00> : vector<32xf32>
    %37 = vector.multi_reduction <add>, %36, %cst_10 [0] : vector<64x32xf32> to vector<32xf32>
    %38 = vector.shape_cast %37 : vector<32xf32> to vector<1x32xf32>
    %cst_11 = arith.constant dense<0.000000e+00> : vector<1x32xf32>
    %39 = tpu.matmul %38, %14, %cst_11 {dimension_numbers = #tpu.dot_dimension_numbers<[1], [0], [0], [1], [0, 0, 1, 1], [], []>} : vector<1x32xf32>, vector<32x32xf32>, vector<1x32xf32> -> vector<1x32xf32>
    %cst_12 = arith.constant 6.400000e+01 : f32
    %40 = vector.broadcast %cst_12 : f32 to vector<1x32xf32>
    %41 = arith.divf %39, %40 : vector<1x32xf32>
    %cst_13 = arith.constant 9.99999997E-7 : f32
    %42 = vector.broadcast %cst_13 : f32 to vector<1x32xf32>
    %43 = arith.addf %41, %42 : vector<1x32xf32>
    %44 = math.rsqrt %43 : vector<1x32xf32>
    %cst_14 = arith.constant dense<0.000000e+00> : vector<1x32xf32>
    %45 = tpu.matmul %44, %27, %cst_14 {dimension_numbers = #tpu.dot_dimension_numbers<[1], [0], [0], [1], [0, 0, 1, 1], [], []>} : vector<1x32xf32>, vector<32x32xf32>, vector<1x32xf32> -> vector<1x32xf32>
    %c0_15 = arith.constant 0 : index
    %c0_16 = arith.constant 0 : index
    %46 = vector.load %arg2[%c0_15, %c0_16] : memref<1x32xf32, #tpu.memory_space<vmem>>, vector<1x32xf32>
    %47 = arith.mulf %45, %46 : vector<1x32xf32>
    %c0_17 = arith.constant 0 : index
    %c0_18 = arith.constant 0 : index
    %48 = vector.load %arg3[%c0_17, %c0_18] : memref<1x32xf32, #tpu.memory_space<vmem>>, vector<1x32xf32>
    %49 = arith.mulf %33, %47 : vector<1x32xf32>
    %50 = arith.subf %48, %49 : vector<1x32xf32>
    %51 = tpu.concatenate %47, %50 in 0 : vector<1x32xf32>, vector<1x32xf32> -> vector<2x32xf32>
    %c0_19 = arith.constant 0 : index
    %c0_20 = arith.constant 0 : index
    %c0_21 = arith.constant 0 : index
    %52 = vector.load %arg4[%c0_19, %c0_20, %c0_21] : memref<1x2x32xf32, #tpu.memory_space<vmem>>, vector<1x2x32xf32>
    %53 = vector.shape_cast %52 : vector<1x2x32xf32> to vector<2x32xf32>
    %54 = vector.shape_cast %51 : vector<2x32xf32> to vector<1x2x32xf32>
    tpu.vector_store %arg4[%c0_19, %c0_20, %c0_21], %54 {strides = array<i32>} : memref<1x2x32xf32, #tpu.memory_space<vmem>>, vector<1x2x32xf32>,
    return
  }
  func.func @transform_0(%arg0: i32) -> (i32, i32, i32) {
    %c0_i32 = arith.constant 0 : i32
    %c0_i32_0 = arith.constant 0 : i32
    %c0_i32_1 = arith.constant 0 : i32
    return %arg0, %c0_i32, %c0_i32_0 : i32, i32, i32
  }
  func.func @transform_1(%arg0: i32) -> (i32, i32) {
    %c0_i32 = arith.constant 0 : i32
    %c0_i32_0 = arith.constant 0 : i32
    %c0_i32_1 = arith.constant 0 : i32
    return %c0_i32, %c0_i32_0 : i32, i32
  }
  func.func @transform_2(%arg0: i32) -> (i32, i32) {
    %c0_i32 = arith.constant 0 : i32
    %c0_i32_0 = arith.constant 0 : i32
    %c0_i32_1 = arith.constant 0 : i32
    return %c0_i32, %c0_i32_0 : i32, i32
  }
  func.func @transform_3(%arg0: i32) -> (i32, i32, i32) {
    %c0_i32 = arith.constant 0 : i32
    %c0_i32_0 = arith.constant 0 : i32
    %c0_i32_1 = arith.constant 0 : i32
    return %arg0, %c0_i32, %c0_i32_0 : i32, i32, i32
  }
}

</mosaic_0001>

<bundles_post_ra>
// kernel: tpu_custom_call.1
= control target key start
LH: loop header
LB: loop body
LE: loop exit
PB: predicated region body
PF: predicated region fallthrough
CT: control target
= control target key end

     0   :  { %8 = vsyncpa [#allocation3], 0  ;;  %s1567_s0 = inlined_call_operand.hbm [shape: f32[2,64,32], index: 0, kind: input, shape index: {}]   ;;  %s1568_s1 = inlined_call_operand.hbm [shape: f32[1,32], index: 1, kind: input, shape index: {}]   ;;  %s1569_s2 = inlined_call_operand.hbm [shape: f32[1,32], index: 2, kind: input, shape index: {}]   ;;  %s1570_s3 = inlined_call_operand.hbm [shape: f32[2,2,32], index: 3, kind: output, shape index: {}]  }
   0x1   :  { %10 = vsyncpa [#allocation3 + $0x1], 0 }
   0x2   :  { %11 = vsyncpa [#allocation6], 0 }
   0x3   :  { %12 = vsyncpa [#allocation4], 0 }
   0x4   :  { %14 = vsyncpa [#allocation4 + $0x1], 0  ;;  %s1149_s12 = smov 0   ;;  %s1151_s13 = smov 0  }
   0x5   :  { %s1153_s14 = smov 0   ;;  %s1155_s15 = smov 0  }
   0x6 LB: > { %s1170_s16 = sadd.s32 4294967295, %s1117_s15   ;;  %s752_s17 = sadd.s32 4294967294, %s1117_s15   ;;  %s1117_s15 = sphi %s1155_s15, %s1607_s15   ;;  %s1113_s14 = sphi %s1153_s14, %s1606_s14   ;;  %s1109_s13 = sphi %s1151_s13, %s1605_s13   ;;  %s1105_s12 = sphi %s1149_s12, %s1604_s12  }
   0x7   : > { %s1174_s18 = sadd.s32 1, %s1117_s15   ;;  %s27_s19 = sadd.s32 1, %s1113_s14 }
   0x8   : > { %s24_s20 = ssub.s32 %s1117_s15, %s1174_s18  ;;  %p34_p0 = scmp.ne.s32.totalorder %s1113_s14, %s1109_s13 }
   0x9   : > { %p25_p1 = scmp.eq.s32.totalorder %s24_s20, 0  ;;  %p35_p2 = scmp.eq.s32.totalorder %s1117_s15, 0 }
   0xa   : > { %p40_p3 = scmp.ne.s32.totalorder %s1109_s13, %s1105_s12  ;;  %p1571_p4 = scmp.eq.s32.totalorder %s1170_s16, 0 }
   0xb   : > { %s1186_s21 = scalar_select %p25_p1, %s1113_s14, %s27_s19  }
   0xc   : > { %p1188_p5 = por %p35_p2, %p34_p0  ;;  %p1194_p6 = por %p1571_p4, %p40_p3 }
   0xd   : > { %p106_p7 = scmp.eq.s32.totalorder %s1170_s16, 1  ;;  %p112_p8 = scmp.eq.s32.totalorder %s752_s17, 1 }
   0xe   : > { %s1577_s23 = scalar_select %p1194_p6, 1, 0 }
   0xf   : > { %p753_p9 = scmp.ge.s32.totalorder %s1117_s15, 1  ;;  %p119_p10 = scmp.lt.s32.totalorder %s1117_s15, 3 }
  0x10   : > { %p1201_p11 = por %p106_p7, %p34_p0  ;;  %p1205_p12 = por %p112_p8, %p40_p3 }
  0x11   : > { %p1209_p13 = pnand %p753_p9, %p119_p10  ;;  %s1119_s27 = smov [#allocation5]  }
  0x12   : > { %s1578_s24 = scalar_select %p1201_p11, 1, 0 }
  0x13   : > { %s1579_s25 = scalar_select %p1205_p12, 1, 0 }
  0x14   : > { %s1580_s26 = scalar_select %p1209_p13, 1, 0 }
  0x15   : > { %p898_p2 = pneg %p1209_p13  ;;  %s132_s28 = sshll.u32 %s1119_s27, 4  ;;  %s133_s28 = int_to_ptr.vmem [resolvable:$true] %s132_s28 }
  0x16   : > { %p915_p4 = scmp.lt.s32.totalorder %s1117_s15, 2  ;;  %p1581_p0 = scmp.eq.s32.totalorder %s1170_s16, 0 }
  0x17   : > { %s1120_s4 = smov [#allocation7]   ;;  %s961_s8 = scalar_lea.hbm %s1568_s1, 16 }
  0x18   : > { %p1219_p7 = pnand %p898_p2, %p1581_p0  ;;  %p1225_p3 = pnand %p915_p4, %p1188_p5 }
  0x19   : > { %s143_s5 = sshll.u32 %s1120_s4, 4  ;;  %p962_p8 = scmp.ne.s32.totalorder %s1568_s1, %s961_s8  ;;  %s1229_s5 = int_to_ptr.vmem [resolvable:$true] %s143_s5 }
  0x1a   : > { %s1583_s30 = scalar_select %p1225_p3, 1, 0 }
  0x1b   : > { %p963_p9 = pneg %p1219_p7  ;;  %p968_p10 = scmp.lt.u32.totalorder %s961_s8, %s1568_s1 }
  0x1d   : > { %p964_p4 = pnand %p963_p9, %p962_p8 }
  0x1f   : > { %p965_p5 = pneg %p964_p4 }
  0x21   : > { %p970_p2 = pnand %p968_p10, %p965_p5 }
  0x23   : > { %973 = shalt.err (!%p970_p2)
}
  0x24   : > { %s974_s19 = scalar_lea.vmem %s133_s28, 16  ;;  %s981_s20 = scalar_lea.vmem %s133_s28, 32 }
  0x25   : > { %p975_p0 = scmp.ne.s32.totalorder %s133_s28, %s974_s19  ;;  %p982_p11 = scmp.lt.s32.totalorder %s133_s28, %s133_s28 }
  0x26   : > { %p983_p6 = scmp.lt.s32.totalorder %s981_s20, %s974_s19 }
  0x27   : > { %p977_p1 = pnand %p975_p0, %p963_p9 }
  0x28   : > { %p984_p13 = por %p983_p6, %p982_p11 }
  0x29   : > { %p978_p12 = pneg %p977_p1 }
  0x2b   : > { %p985_p3 = pnand %p984_p13, %p978_p12 }
  0x2d   : > { %988 = shalt.err (!%p985_p3)
}
  0x2e   : > { %901 = dma.hbm_to_vmem [thread:$0]  (!%p1219_p7), %s1568_s1, 16, %s133_s28, [#allocation6]  }
  0x2f   : > { %s154_s4 = sand.u32 1, %s1113_s14   ;;  %s989_s8 = scalar_lea.hbm %s1569_s2, 16 }
  0x30   : > { %p990_p1 = scmp.ne.s32.totalorder %s1569_s2, %s989_s8  ;;  %p996_p12 = scmp.lt.u32.totalorder %s989_s8, %s1569_s2 }
  0x32   : > { %p992_p6 = pnand %p990_p1, %p963_p9 }
  0x34   : > { %p993_p11 = pneg %p992_p6 }
  0x36   : > { %p998_p13 = pnand %p996_p12, %p993_p11 }
  0x38   : > { %1001 = shalt.err (!%p998_p13)
}
  0x39   : > { %s1002_s28 = scalar_lea.vmem %s1229_s5, 16  ;;  %s1009_s19 = scalar_lea.vmem %s1229_s5, 32 }
  0x3a   : > { %p1003_p3 = scmp.ne.s32.totalorder %s1229_s5, %s1002_s28  ;;  %p1010_p5 = scmp.lt.s32.totalorder %s1229_s5, %s1229_s5 }
  0x3b   : > { %p1011_p10 = scmp.lt.s32.totalorder %s1009_s19, %s1002_s28 }
  0x3c   : > { %p1005_p8 = pnand %p1003_p3, %p963_p9 }
  0x3d   : > { %p1012_p2 = por %p1011_p10, %p1010_p5 }
  0x3e   : > { %p1006_p4 = pneg %p1005_p8 }
  0x40   : > { %p1013_p0 = pnand %p1012_p2, %p1006_p4 }
  0x42   : > { %1016 = shalt.err (!%p1013_p0)
}
  0x43   : > { %904 = dma.hbm_to_vmem [thread:$0]  (!%p1219_p7), %s1569_s2, 16, %s1229_s5, [#allocation6]  }
  0x44   : > { %s757_s27 = sshll.u32 %s154_s4, 6  ;;  %s797_s6 = sshll.u32 %s1117_s15, 10 }
  0x45   : > { %s1284_s9 = scalar_lea.hbm %s1567_s0, %s797_s6  ;;  %s158_s29 = scalar_lea.vmem [#allocation2], %s757_s27 }
  0x46   : > { %s165_s10 = sshll.u32 %s158_s29, 4  ;;  %s1288_s11 = scalar_lea.sflag [#allocation3], %s154_s4  ;;  %s1286_s10 = int_to_ptr.vmem [resolvable:$true] %s165_s10 }
  0x47   : > { %s1017_s17 = scalar_lea.hbm %s1284_s9, 1024  ;;  %p1584_p7 = scmp.ne.s32.totalorder %s1583_s30, 0 }
  0x48   : > { %p1018_p9 = scmp.ne.s32.totalorder %s1284_s9, %s1017_s17  ;;  %s1022_s19 = scalar_lea.hbm %s1567_s0, 2048 }
  0x49   : > { %p1019_p1 = pneg %p1584_p7  ;;  %p1023_p12 = scmp.lt.u32.totalorder %s1284_s9, %s1567_s0 }
  0x4a   : > { %p1024_p13 = scmp.lt.u32.totalorder %s1022_s19, %s1017_s17  ;;  %p1026_p8 = scmp.lt.u32.totalorder %s1017_s17, %s1284_s9 }
  0x4b   : > { %p1020_p6 = pnand %p1019_p1, %p1018_p9 }
  0x4c   : > { %p1025_p3 = por %p1024_p13, %p1023_p12 }
  0x4d   : > { %p1021_p11 = pneg %p1020_p6 }
  0x4e   : > { %p1027_p4 = por %p1026_p8, %p1025_p3 }
  0x50   : > { %p1028_p5 = pnand %p1027_p4, %p1021_p11 }
  0x52   : > { %1031 = shalt.err (!%p1028_p5)
}
  0x53   : > { %s1032_s4 = scalar_lea.vmem %s1286_s10, 1024  ;;  %s1121_s27 = smov [#allocation2]  }
  0x54   : > { %p1033_p10 = scmp.ne.s32.totalorder %s1286_s10, %s1032_s4  ;;  %s1037_s6 = sshll.u32 %s1121_s27, 4  ;;  %s1038_s6 = int_to_ptr.vmem [resolvable:$false] %s1037_s6 }
  0x55   : > { %s1039_s7 = scalar_lea.vmem %s1038_s6, 2048  ;;  %p1040_p9 = scmp.lt.s32.totalorder %s1286_s10, %s1038_s6 }
  0x56   : > { %p1035_p2 = pnand %p1033_p10, %p1019_p1  ;;  %p1041_p6 = scmp.lt.s32.totalorder %s1039_s7, %s1032_s4 }
  0x58   : > { %p1036_p0 = pneg %p1035_p2  ;;  %p1042_p12 = por %p1041_p6, %p1040_p9 }
  0x5a   : > { %p1043_p13 = pnand %p1042_p12, %p1036_p0 }
  0x5c   : > { %1046 = shalt.err (!%p1043_p13)
}
  0x5d   : > { %s1122_s8 = smov 128   ;;  %s1123_s29 = smov 8  }
  0x5e   : > { %908 = dma.hbm_to_vmem [thread:$0]  (!%p1584_p7), %s1284_s9, 1024, %s1286_s10, %s1288_s11, %s1122_s8, %s1122_s8, %s1123_s29  }
  0x5f   : > { %p1585_p1 = scmp.ne.s32.totalorder %s1580_s26, 0 }
  0x60   : > { %s1319_s17 = sand.u32 (!%p1585_p1), 1, %s1109_s13   ;;  %p1586_p11 = scmp.ne.s32.totalorder (!%p1585_p1), %s1577_s23, 0 }
  0x61   : > { %177 = sbr.rel (%p1585_p1) target bundleno = 1059 (0x423), region = 32  ;;  %s761_s5 = sshll.u32 (!%p1585_p1), %s1319_s17, 6 }
  0x62   : > { %s180_s28 = scalar_lea.sflag (!%p1585_p1), [#allocation3], %s1319_s17  ;;  %s1323_s19 = scalar_lea.vmem (!%p1585_p1), [#allocation2], %s761_s5 }
  0x68   : > { %1092 = dma.done.wait (%p1586_p11), %s180_s28, 1024  }
  0x69   : > { %1094 = vsyncadd (%p1586_p11), %s180_s28, 4294966272  ;;  %p1587_p7 = scmp.eq.s32.totalorder %s1170_s16, 0 }
  0x6b   : > { %1096 = dma.done.wait (%p1587_p7), [#allocation6], 32   ;;  %p1588_p3 = pmov %p1587_p7 }
  0x6c   : > { %v222_v0 = vlaneseq  ;;  %v1124_v1 = vmov 0.0|0.0   ;;  %vm1125_vm0 = vmmov 0   ;;  %v1126_v4 = vmov 0.0   ;;  %v1366_v11 = vld [vmem:[%s1323_s19] sm:$0xff]  ;;  %v1369_v12 = vld [vmem:[%s1323_s19 + $0x8] sm:$0xff]  ;;  %v1377_v14 = vld [vmem:[%s1323_s19 + $0x10] sm:$0xff] }
  0x6d   : > { %1098 = vsyncadd (%p1588_p3), [#allocation6], 4294967264  ;;  %862 = vmatprep.subr.bf16.mxu0 %v1124_v1  ;;  %868 = vmatprep.subr.bf16.mxu1 %v1124_v1  ;;  %vm274_vm2 = vcmask 261120   ;;  %v1380_v15 = vld [vmem:[%s1323_s19 + $0x18] sm:$0xff]  ;;  %v1391_v19 = vld [vmem:[%s1323_s19 + $0x20] sm:$0xff]  ;;  %s764_s23 = sshll.u32 %s1319_s17, 1 }
  0x6e   : > { %v1335_v2 = vshrl.u32 %v222_v0, 7  ;;  %v1337_v3 = vand.u32 127, %v222_v0  ;;  %826 = vmatprep.mubr.msk.f32.mxu0 %vm1125_vm0, %v1126_v4  ;;  %837 = vmatprep.mubr.msk.f32.mxu1 %vm1125_vm0, %v1126_v4  ;;  %v275_v16 = vsel %vm274_vm2, %v1366_v11, 0.0  ;;  %v276_v17 = vsel %vm274_vm2, %v1369_v12, 0.0  ;;  %v1425_v26 = vld [vmem:[%s1323_s19 + $0x28] sm:$0xff]  ;;  %v1436_v29 = vld [vmem:[%s1323_s19 + $0x30] sm:$0xff] }
  0x6f   : > { %v277_v20 = vadd.f32 %v276_v17, %v275_v16  ;;  %v278_v21 = vsel %vm274_vm2, %v1377_v14, 0.0  ;;  %v1127_v22 = vmov 1.0|1.0   ;;  %v280_v24 = vsel %vm274_vm2, %v1380_v15, 0.0  ;;  %v221_v34 = vld [vmem:[%s1323_s19 + $0x38] sm:$0xff]  ;;  %s794_s26 = sshll.u32 %s1170_s16, 5 }
  0x70   : > { %v224_v5 = vadd.s32 8, %v1335_v2  ;;  %vm229_vm1 = vcmp.ge.s32.totalorder %v1335_v2, %v1337_v3  ;;  %v233_v6 = vadd.s32 1, %v1337_v3  ;;  %v1348_v7 = vadd.s32 16, %v1335_v2  ;;  %s213_s30 = scalar_lea.vmem [#allocation8], %s764_s23  ;;  %s1523_s20 = scalar_lea.hbm %s1570_s3, %s794_s26 }
  0x71   : > { %v1351_v8 = vadd.s32 24, %v1335_v2  ;;  %v254_v9 = vadd.s32 1, %v1335_v2  ;;  %vm250_vm14 = vcmp.ge.s32.totalorder %v1337_v3, %v1335_v2  ;;  %v279_v27 = vadd.f32 %v278_v21, %v277_v20  ;;  %s663_s9 = sshll.u32 %s213_s30, 4  ;;  %s650_s22 = scalar_lea.sflag [#allocation4], %s1319_s17  ;;  %s1525_s9 = int_to_ptr.vmem [resolvable:$true] %s663_s9 }
  0x72   : > { %vm230_vm3 = vcmp.ge.s32.totalorder %v224_v5, %v1337_v3  ;;  %vm234_vm4 = vcmp.lt.s32.totalorder %v1335_v2, %v233_v6  ;;  %vm235_vm5 = vcmp.lt.s32.totalorder %v224_v5, %v233_v6  ;;  %vm231_vm7 = vcmp.ge.s32.totalorder %v1348_v7, %v1337_v3  ;;  %s1047_s4 = scalar_lea.vmem %s1525_s9, 32  ;;  %p1601_p4 = scmp.ne.s32.totalorder %s1578_s24, 0 }
  0x73   : > { %vm1356_vm6 = vmand %vm229_vm1, %vm234_vm4  ;;  %vm232_vm8 = vcmp.ge.s32.totalorder %v1351_v8, %v1337_v3  ;;  %vm236_vm9 = vcmp.lt.s32.totalorder %v1348_v7, %v233_v6  ;;  %vm237_vm11 = vcmp.lt.s32.totalorder %v1351_v8, %v233_v6  ;;  %v255_v18 = vadd.s32 1, %v224_v5  ;;  %p1048_p8 = scmp.ne.s32.totalorder %s1525_s9, %s1047_s4  ;;  %s1128_s16 = smov [#allocation8]  }
  0x74   : > { %vm1371_vm10 = vmand %vm230_vm3, %vm235_vm5  ;;  %vm258_vm15 = vcmp.lt.s32.totalorder %v1337_v3, %v254_v9  ;;  %vm251_vm3 = vcmp.ge.s32.totalorder %v1337_v3, %v224_v5  ;;  %v282_v28 = vsel %vm274_vm2, %v1391_v19, 0.0  ;;  %v281_v30 = vadd.f32 %v280_v24, %v279_v27  ;;  %s1051_s27 = sshll.u32 %s1128_s16, 4  ;;  %s1052_s27 = int_to_ptr.vmem [resolvable:$false] %s1051_s27 }
  0x75   : > { %vm863_vm12 = vmpackc.low %vm1371_vm10, %vm1356_vm6  ;;  %vm259_vm4 = vcmp.lt.s32.totalorder %v1337_v3, %v255_v18  ;;  %v284_v32 = vsel %vm274_vm2, %v1425_v26, 0.0  ;;  %v286_v36 = vsel %vm274_vm2, %v1436_v29, 0.0  ;;  %v288_v38 = vsel %vm274_vm2, %v221_v34, 0.0  ;;  %p1049_p5 = pnand %p1048_p8, %p1601_p4  ;;  %s1053_s6 = scalar_lea.vmem %s1052_s27, 64 }
  0x76   : > { %864 = vmatpush3.bf16.msk.msra.mxu0 %vm863_vm12, %v1127_v22  ;;  %vm1405_vm13 = vmand %vm231_vm7, %vm236_vm9  ;;  %v283_v35 = vadd.f32 %v282_v28, %v281_v30  ;;  %v256_v47 = vadd.s32 1, %v1348_v7  ;;  %v257_v48 = vadd.s32 1, %v1351_v8  ;;  %vm253_vm6 = vcmp.ge.s32.totalorder %v1337_v3, %v1351_v8  ;;  %p1054_p2 = scmp.lt.s32.totalorder %s1525_s9, %s1052_s27  ;;  %p1055_p0 = scmp.lt.s32.totalorder %s1053_s6, %s1047_s4 }
  0x77   : > { %865 = vmatprep.subr.bf16.mxu0 %v1124_v1  ;;  %vm1420_vm1 = vmand %vm232_vm8, %vm237_vm11  ;;  %vm252_vm11 = vcmp.ge.s32.totalorder %v1337_v3, %v1348_v7  ;;  %v446_v52 = vsub.s32 0, %v1335_v2  ;;  %p1050_p10 = pneg %p1049_p5 }
  0x78   : > { %vm866_vm5 = vmpackc.low %vm1420_vm1, %vm1405_vm13  ;;  %v285_v37 = vadd.f32 %v284_v32, %v283_v35  ;;  %vm260_vm10 = vcmp.lt.s32.totalorder %v1337_v3, %v256_v47  ;;  %vm647_vm13 = vcmask 254976   ;;  %p1056_p9 = por %p1055_p0, %p1054_p2 }
  0x79   : > { %vm1438_vm7 = vmand %vm250_vm14, %vm258_vm15 }
  0x7a   : > { %867 = vmatpush3.bf16.msk.msra.mxu0 %vm866_vm5, %v1127_v22  ;;  %vm1449_vm8 = vmand %vm251_vm3, %vm259_vm4  ;;  %v287_v39 = vadd.f32 %v286_v36, %v285_v37  ;;  %p1057_p6 = pnand %p1056_p9, %p1050_p10 }
  0x7b   : > { %vm869_vm9 = vmpackc.low %vm1449_vm8, %vm1438_vm7  ;;  %874 = vmatprep.subr.bf16.mxu0 %v1124_v1 }
  0x7c   : > { %870 = vmatpush3.bf16.msk.msra.mxu1 %vm869_vm9, %v1127_v22  ;;  %v289_v40 = vadd.f32 %v288_v38, %v287_v39  ;;  %vm264_vm14 = vmand %vm252_vm11, %vm260_vm10  ;;  %v636_v38 = vld [vmem:[#allocation7] sm:$0x1] }
  0x7d   : > { %871 = vmatprep.subr.bf16.mxu1 %v1124_v1 }
  0x7e   : > { %v290_v41 = vrot.slane %v289_v40, 4 }
  0x80   : > { %v291_v42 = vadd.f32 %v290_v41, %v289_v40 }
  0x82   : > { %v292_v43 = vrot.slane %v291_v42, 2 }
  0x84   : > { %v293_v44 = vadd.f32 %v292_v43, %v291_v42 }
  0x86   : > { %v294_v45 = vrot.slane %v293_v44, 1 }
  0x88   : > { %v295_v46 = vadd.f32 %v294_v45, %v293_v44 }
  0x8a   : > { %827 = vmatmul.mubr.msk.f32.vlgmr.msra.gmra.mrb[0].mxu0 %vm274_vm2, %v295_v46 }
  0x8b   : > { %876 = vmatpush3.bf16.msk.msra.mxu0 %vm863_vm12, %v1127_v22  ;;  %848 = vmatprep.mubr.msk.f32.mxu0 %vm1125_vm0, %v1126_v4  ;;  %vm261_vm12 = vcmp.lt.s32.totalorder %v1337_v3, %v257_v48 }
  0x8c   : > { %877 = vmatprep.subr.bf16.mxu0 %v1124_v1  ;;  %vm265_vm15 = vmand %vm253_vm6, %vm261_vm12 }
  0x8d   : > { %vm872_vm3 = vmpackc.low %vm265_vm15, %vm264_vm14 }
  0x8e   : > { %873 = vmatpush3.bf16.msk.msra.mxu1 %vm872_vm3, %v1127_v22 }
  0x8f   : > { %879 = vmatpush3.bf16.msk.msra.mxu0 %vm866_vm5, %v1127_v22  ;;  %880 = vmatprep.subr.bf16.mxu1 %v1124_v1 }
 0x15d   : > { %v365_v49 = vpop.f32.mrb[0].mxu0 }
 0x15e   : > { %v370_v50 = vmul.f32 0.015625, %v365_v49  ;;  %v828_v51 = vpop.f32.mrb[1].mxu0 }
 0x160   : > { %838 = vmatmul.mubr.msk.f32.vlgmr.msra.gmra.mrb[0].mxu1 %vm274_vm2, %v370_v50 }
 0x161   : > { %882 = vmatpush3.bf16.msk.msra.mxu1 %vm869_vm9, %v1127_v22  ;;  %859 = vmatprep.mubr.msk.f32.mxu1 %vm1125_vm0, %v1126_v4  ;;  %vm645_vm0 = vcmask 1040384  }
 0x162   : > { %883 = vmatprep.subr.bf16.mxu1 %v1124_v1 }
 0x165   : > { %885 = vmatpush3.bf16.msk.msra.mxu1 %vm872_vm3, %v1127_v22 }
 0x233   : > { %v440_v53 = vpop.f32.mrb[0].mxu1 }
 0x234   : > { %v447_v54 = vrot.slane %v440_v53, %v446_v52  ;;  %v839_v55 = vpop.f32.mrb[1].mxu1 }
 0x236   : > { %v448_v56 = vsub.f32 %v1366_v11, %v447_v54  ;;  %v449_v57 = vsub.f32 %v1369_v12, %v447_v54  ;;  %v450_v58 = vsub.f32 %v1377_v14, %v447_v54  ;;  %v451_v59 = vsub.f32 %v1380_v15, %v447_v54 }
 0x237   : > { %v452_v60 = vsub.f32 %v1391_v19, %v447_v54  ;;  %v453_v0 = vsub.f32 %v1425_v26, %v447_v54  ;;  %v454_v5 = vsub.f32 %v1436_v29, %v447_v54  ;;  %v455_v9 = vsub.f32 %v221_v34, %v447_v54  ;;  %v634_v34 = vld [vmem:[#allocation5] sm:$0x1] }
 0x238   : > { %v456_v61 = vmul.f32 %v448_v56, %v448_v56  ;;  %v457_v62 = vmul.f32 %v449_v57, %v449_v57  ;;  %v458_v63 = vmul.f32 %v450_v58, %v450_v58  ;;  %v459_v1 = vmul.f32 %v451_v59, %v451_v59 }
 0x239   : > { %v460_v6 = vmul.f32 %v452_v60, %v452_v60  ;;  %v461_v10 = vmul.f32 %v453_v0, %v453_v0  ;;  %v462_v13 = vmul.f32 %v454_v5, %v454_v5  ;;  %v463_v16 = vmul.f32 %v455_v9, %v455_v9 }
 0x23a   : > { %v464_v2 = vsel %vm274_vm2, %v456_v61, 0.0  ;;  %v465_v3 = vsel %vm274_vm2, %v457_v62, 0.0  ;;  %v467_v7 = vsel %vm274_vm2, %v458_v63, 0.0  ;;  %v469_v11 = vsel %vm274_vm2, %v459_v1, 0.0 }
 0x23b   : > { %v466_v4 = vadd.f32 %v465_v3, %v464_v2  ;;  %v471_v14 = vsel %vm274_vm2, %v460_v6, 0.0  ;;  %v473_v17 = vsel %vm274_vm2, %v461_v10, 0.0  ;;  %v475_v19 = vsel %vm274_vm2, %v462_v13, 0.0 }
 0x23c   : > { %v477_v21 = vsel %vm274_vm2, %v463_v16, 0.0 }
 0x23d   : > { %v468_v8 = vadd.f32 %v467_v7, %v466_v4 }
 0x23f   : > { %v470_v12 = vadd.f32 %v469_v11, %v468_v8 }
 0x241   : > { %v472_v15 = vadd.f32 %v471_v14, %v470_v12 }
 0x243   : > { %v474_v18 = vadd.f32 %v473_v17, %v472_v15 }
 0x245   : > { %v476_v20 = vadd.f32 %v475_v19, %v474_v18 }
 0x247   : > { %v478_v22 = vadd.f32 %v477_v21, %v476_v20 }
 0x249   : > { %v479_v23 = vrot.slane %v478_v22, 4 }
 0x24b   : > { %v480_v24 = vadd.f32 %v479_v23, %v478_v22 }
 0x24d   : > { %v481_v25 = vrot.slane %v480_v24, 2 }
 0x24f   : > { %v482_v26 = vadd.f32 %v481_v25, %v480_v24 }
 0x251   : > { %v483_v27 = vrot.slane %v482_v26, 1 }
 0x253   : > { %v484_v28 = vadd.f32 %v483_v27, %v482_v26 }
 0x255   : > { %849 = vmatmul.mubr.msk.f32.vlgmr.msra.gmra.mrb[2].mxu0 %vm274_vm2, %v484_v28 }
 0x328   : > { %v554_v29 = vpop.f32.mrb[2].mxu0 }
 0x329   : > { %v558_v30 = vmul.f32 0.015625, %v554_v29  ;;  %v850_v31 = vpop.f32.mrb[3].mxu0 }
 0x32b   : > { %v559_v32 = vadd.f32 1e-06, %v558_v30 }
 0x32d   : > { %959 = vrsqrt.f32 %v559_v32 }
 0x337   : > { %v960_v33 = vpop.eup %959 }
 0x338   : > { %860 = vmatmul.mubr.msk.f32.vlgmr.msra.gmra.mrb[2].mxu1 %vm274_vm2, %v960_v33 }
 0x40b   : > { %v630_v35 = vpop.f32.mrb[2].mxu1 }
 0x40c   : > { %v635_v36 = vmul.f32 %v634_v34, %v630_v35  ;;  %v861_v37 = vpop.f32.mrb[3].mxu1 }
 0x40e   : > { %v637_v39 = vmul.f32 %v635_v36, %v440_v53 }
 0x410   : > { %v638_v40 = vsub.f32 %v636_v38, %v637_v39 }
 0x412   : > { %v643_v41 = vrot.slane %v638_v40, %v446_v52 }
 0x414   : > { %v646_v42 = vsel %vm645_vm0, %v635_v36, %v643_v41 }
 0x415   : > { %648 = vst.msk [vmem:[%s213_s30] sm:$0x3] %vm647_vm13, %v646_v42 }
 0x416   : > { %1060 = shalt.err (!%p1057_p6)
}
 0x417   : > { %s1061_s7 = scalar_lea.hbm %s1523_s20, 32  ;;  %s1065_s17 = scalar_lea.hbm %s1570_s3, 64 }
 0x418   : > { %p1062_p12 = scmp.ne.s32.totalorder %s1523_s20, %s1061_s7  ;;  %p1066_p11 = scmp.lt.u32.totalorder %s1523_s20, %s1570_s3 }
 0x419   : > { %p1067_p7 = scmp.lt.u32.totalorder %s1065_s17, %s1061_s7  ;;  %p1069_p8 = scmp.lt.u32.totalorder %s1061_s7, %s1523_s20 }
 0x41a   : > { %p1063_p13 = pnand %p1062_p12, %p1601_p4 }
 0x41b   : > { %p1068_p3 = por %p1067_p7, %p1066_p11 }
 0x41c   : > { %p1064_p1 = pneg %p1063_p13 }
 0x41d   : > { %p1070_p5 = por %p1069_p8, %p1068_p3 }
 0x41f   : > { %p1071_p10 = pnand %p1070_p5, %p1064_p1 }
 0x421   : > { %1074 = shalt.err (!%p1071_p10)
}
 0x422   : > { %896 = dma.vmem_to_hbm [thread:$0]  (%p1601_p4), %s1525_s9, 32, %s1523_s20, %s650_s22  }
 0x423 PF: > { %s675_s19 = sand.u32 1, %s1105_s12   ;;  %p1602_p2 = scmp.ne.s32.totalorder %s1579_s25, 0 }
 0x424   : > { %p1603_p0 = scmp.ge.s32.totalorder %s1117_s15, 2  ;;  %s676_s23 = scalar_lea.sflag [#allocation4], %s675_s19 }
 0x426   : > { %p910_p9 = pnand %p1603_p0, %p1602_p2 }
 0x428   : > { %1100 = dma.done.wait (!%p910_p9), %s676_s23, 32  }
 0x429   : > { %1102 = vsyncadd (!%p910_p9), %s676_s23, 4294967264  ;;  %p17_p6 = scmp.ge.s32.totalorder %s1174_s18, 4   ;;  %s1604_s12 = smov %s1109_s13 }
 0x42a   : > { %s1605_s13 = smov %s1113_s14  ;;  %s1606_s14 = smov %s1186_s21 }
 0x42b   : > { %s1607_s15 = smov %s1174_s18  ;;  %19 = sbr.rel (!%p17_p6) target bundleno = 6 (0x6), region = 85 }
 0x432   :  { %681 = vsyncpa [#allocation3], 1 }
 0x433   :  { %683 = vsyncpa [#allocation3 + $0x1], 1 }
 0x434   :  { %684 = vsyncpa [#allocation6], 1 }
 0x435   :  { %685 = vsyncpa [#allocation4], 1 }
 0x436   :  { %687 = vsyncpa [#allocation4 + $0x1], 1 }

</bundles_post_ra>
